<compile_context>
chip_gen: v6e
topology: v6e:2x2x1
jax: 0.10.0
libtpu: 0.0.40
codegen_flags: <defaults>
</compile_context>

<pallas_src>
import functools

import jax
import jax.numpy as jnp
from jax.experimental import pallas as pl
from jax.experimental.pallas import tpu as pltpu


# 48 MiB fits v7x's 64 MiB physical VMEM with headroom and is well under the
# 128 MiB of v5e/v6e; it is also above the 16/32 MiB default scoped limits.
_VMEM_BUDGET_BYTES = 48 * 1024 * 1024
_ROW_TILE_HARD_CAP = 512          # rows per tile upper bound
_K_TILE_TARGET = 2048             # add a K grid axis only when in_dim exceeds this


def _round_up(x, m):
    return (x + m - 1) // m * m


def _cdiv(a, b):
    return -(-a // b)


def _row_pack(dtype):
    # sublane packing: 8 rows for 4-byte, 16 for 2-byte, 32 for 1-byte dtypes
    return 8 * (4 // jnp.dtype(dtype).itemsize)


def _choose_row_tiles(M, row_pack, tm_cap, prefer_two):
    """Balanced row tiling: avoids near-2x padded work for ragged M."""
    tm_cap = max(row_pack, (tm_cap // row_pack) * row_pack)
    n_tiles = _cdiv(M, tm_cap)
    if prefer_two and n_tiles < 2 and M > row_pack:
        n_tiles = 2                      # give both v7x TensorCores work
    tm = _round_up(_cdiv(M, n_tiles), row_pack)
    return tm, n_tiles * tm, n_tiles


def _gelu_ln_epilogue(y, bgb, *, apply_gelu, eps, valid_h, out_dtype):
    """LayerNorm((GELU?)(y + bias)) * gamma + beta on a (tm, Hp) f32 tile.

    bgb is a (3, Hp) [bias; gamma; beta] tile.  Padded lanes (>= valid_h) of
    y/bias/gamma/beta are zero, so the only correction LayerNorm needs is the
    analytic (Hp - H) * mean^2 term -- no iota / selects.
    """
    bias = bgb[0:1].astype(jnp.float32)
    gamma = bgb[1:2].astype(jnp.float32)
    beta = bgb[2:3].astype(jnp.float32)

    y = y + bias
    if apply_gelu:
        # exact erf-based GELU (nn.GELU() default); erf lands on the EUP.
        y = 0.5 * y * (1.0 + jax.lax.erf(y * jnp.float32(0.7071067811865476)))

    hp = y.shape[-1]
    inv_h = jnp.float32(1.0 / valid_h)
    mean = jnp.sum(y, axis=-1, keepdims=True) * inv_h
    diff = y - mean
    sq = jnp.sum(diff * diff, axis=-1, keepdims=True)
    if hp != valid_h:
        # padded lanes contribute (hp - valid_h) * mean^2 to sq; remove it.
        sq = sq - jnp.float32(hp - valid_h) * (mean * mean)
    var = sq * inv_h
    norm = diff * jax.lax.rsqrt(var + jnp.float32(eps))
    return (norm * gamma + beta).astype(out_dtype)


def _per_level_kernel(x_ref, w_ref, bgb_ref, o_ref, acc_ref, *,
                      apply_gelu, eps, valid_h, n_k, mxu_dtype):
    """grid = (L, row_tiles, k_tiles). One (tm, Hp) output tile per (level, row tile)."""
    x = x_ref[...]
    w = w_ref[...]
    if mxu_dtype is not None:
        x = x.astype(mxu_dtype)
        w = w.astype(mxu_dtype)
    partial_dot = jnp.dot(x, w, preferred_element_type=jnp.float32)

    if n_k == 1:
        o_ref[...] = _gelu_ln_epilogue(
            partial_dot, bgb_ref[...], apply_gelu=apply_gelu, eps=eps,
            valid_h=valid_h, out_dtype=o_ref.dtype)
    else:
        k = pl.program_id(2)

        @pl.when(k == 0)
        def _():
            acc_ref[...] = jnp.zeros_like(acc_ref)

        acc_ref[...] += partial_dot

        @pl.when(k == n_k - 1)
        def _():
            o_ref[...] = _gelu_ln_epilogue(
                acc_ref[...], bgb_ref[...], apply_gelu=apply_gelu, eps=eps,
                valid_h=valid_h, out_dtype=o_ref.dtype)


def _shared_x_kernel(x_ref, w_ref, bgb_ref, o_ref, *,
                     num_levels, apply_gelu, eps, valid_h, mxu_dtype):
    """grid = (row_tiles,). x tile is loaded once; the level loop runs in-kernel
    against the resident [L, K, Hp] weight stack (no re-streaming of shared x)."""
    x = x_ref[...]
    if mxu_dtype is not None:
        x = x.astype(mxu_dtype)
    for lvl in range(num_levels):            # static unroll; L is small
        w = w_ref[lvl]
        if mxu_dtype is not None:
            w = w.astype(mxu_dtype)
        y = jnp.dot(x, w, preferred_element_type=jnp.float32)
        o_ref[lvl] = _gelu_ln_epilogue(
            y, bgb_ref[lvl], apply_gelu=apply_gelu, eps=eps,
            valid_h=valid_h, out_dtype=o_ref.dtype)


def fused_linear_layernorm_levels(x, w, b, gamma, beta, *, apply_gelu,
                                  per_level_x=False, eps=1e-5, mxu_dtype=None):
    """Fused multi-level Linear (+ optional GELU) + LayerNorm.

    x:               [..., K]      (shared across levels, per_level_x=False)
                 or  [L, ..., K]   (one input per level,  per_level_x=True)
    w:               [L, K, H]
    b, gamma, beta:  [L, H]
    Returns          [L, ..., H]
    """
    L, K, H = w.shape
    if per_level_x:
        assert x.shape[0] == L and x.shape[-1] == K
        lead_shape = x.shape[1:-1]
    else:
        assert x.shape[-1] == K
        lead_shape = x.shape[:-1]
    M = 1
    for s in lead_shape:
        M *= s

    x_item = jnp.dtype(x.dtype).itemsize
    w_item = jnp.dtype(w.dtype).itemsize
    out_dtype = x.dtype
    out_item = jnp.dtype(out_dtype).itemsize
    row_pack = _row_pack(x.dtype)

    # Lane-dense H only when the relative padding waste is small (<= ~1/3);
    # for small H (e.g. 32) padding to 128 would 4x the MXU flops / output bytes,
    # so we keep the true H and accept masked stores instead.
    Hp_cand = _round_up(H, 128)
    Hp = Hp_cand if (Hp_cand != H and (Hp_cand - H) * 3 <= H) else H
    if Hp != H:
        w = jnp.pad(w, ((0, 0), (0, 0), (0, Hp - H)))
        b = jnp.pad(b, ((0, 0), (0, Hp - H)))
        gamma = jnp.pad(gamma, ((0, 0), (0, Hp - H)))
        beta = jnp.pad(beta, ((0, 0), (0, Hp - H)))

    # Pack bias/gamma/beta into one operand -> one small DMA instead of three.
    bgb = jnp.stack([b, gamma, beta], axis=1)            # [L, 3, Hp]

    use_shared = not per_level_x
    if use_shared:
        # VMEM budget check for the resident weight stack.
        fixed = L * K * Hp * w_item + L * 3 * Hp * w_item + (64 << 10)
        per_row = 2 * K * x_item + 2 * L * Hp * out_item + 4 * Hp * 4
        tm_cap = (_VMEM_BUDGET_BYTES - fixed) // per_row if fixed < _VMEM_BUDGET_BYTES else 0
        tm_cap = min(_ROW_TILE_HARD_CAP, (tm_cap // row_pack) * row_pack)
        if tm_cap < row_pack:
            # Resident weights too big: fall back to the per-level grid path
            # (shared x gets re-streamed L times there).
            use_shared = False

    if use_shared:
        tm, M_pad, n_tiles = _choose_row_tiles(M, row_pack, tm_cap, prefer_two=True)
        x_flat = x.reshape(M, K)
        if M_pad != M:
            x_flat = jnp.pad(x_flat, ((0, M_pad - M), (0, 0)))

        kernel = functools.partial(
            _shared_x_kernel, num_levels=L, apply_gelu=apply_gelu, eps=eps,
            valid_h=H, mxu_dtype=mxu_dtype)

        out = pl.pallas_call(
            kernel,
            out_shape=jax.ShapeDtypeStruct((L, M_pad, Hp), out_dtype),
            grid_spec=pltpu.PrefetchScalarGridSpec(
                num_scalar_prefetch=0,
                grid=(n_tiles,),
                in_specs=[
                    pl.BlockSpec((tm, K), lambda i: (i, 0)),
                    # level-constant operands: resident + single-buffered
                    pl.BlockSpec((L, K, Hp), lambda i: (0, 0, 0),
                                 pipeline_mode=pl.Buffered(1)),
                    pl.BlockSpec((L, 3, Hp), lambda i: (0, 0, 0),
                                 pipeline_mode=pl.Buffered(1)),
                ],
                out_specs=pl.BlockSpec((L, tm, Hp), lambda i: (0, i, 0)),
            ),
            compiler_params=pltpu.CompilerParams(
                dimension_semantics=("parallel",),
                vmem_limit_bytes=_VMEM_BUDGET_BYTES),
        )(x_flat, w, bgb)
    else:
        # ---- per-level grid path: grid = (L, row_tiles, k_tiles) ----
        n_k = 1 if K <= _K_TILE_TARGET else _cdiv(K, _K_TILE_TARGET)
        while True:
            tk = K if n_k == 1 else _round_up(_cdiv(K, n_k), 128)
            K_pad = n_k * tk
            w_bufs = 1 if n_k == 1 else 2
            fixed = w_bufs * tk * Hp * w_item + 2 * 3 * Hp * w_item + (64 << 10)
            per_row = 2 * tk * x_item + 2 * Hp * out_item + Hp * 4 + 3 * Hp * 4
            tm_cap = ((_VMEM_BUDGET_BYTES - fixed) // per_row
                      if fixed < _VMEM_BUDGET_BYTES else 0)
            tm_cap = min(_ROW_TILE_HARD_CAP, (tm_cap // row_pack) * row_pack)
            if tm_cap >= row_pack or tk <= 512:
                break
            n_k *= 2
        # TODO(synk): extreme Hp could still overshoot the budget here; shrink Hp tiling.
        tm_cap = max(tm_cap, row_pack)

        tm, M_pad, n_tiles = _choose_row_tiles(M, row_pack, tm_cap, prefer_two=(L == 1))

        if K_pad != K:
            w = jnp.pad(w, ((0, 0), (0, K_pad - K), (0, 0)))

        if per_level_x:
            x_flat = x.reshape(L, M, K)
            if M_pad != M or K_pad != K:
                x_flat = jnp.pad(x_flat, ((0, 0), (0, M_pad - M), (0, K_pad - K)))
            x_spec = pl.BlockSpec((None, tm, tk), lambda l, i, k: (l, i, k))
        else:
            x_flat = x.reshape(M, K)
            if M_pad != M or K_pad != K:
                x_flat = jnp.pad(x_flat, ((0, M_pad - M), (0, K_pad - K)))
            x_spec = pl.BlockSpec((tm, tk), lambda l, i, k: (i, k))

        if n_k == 1:
            # level-constant across the inner axes: single-buffer to save VMEM.
            w_spec = pl.BlockSpec((None, tk, Hp), lambda l, i, k: (l, k, 0),
                                  pipeline_mode=pl.Buffered(1))
        else:
            w_spec = pl.BlockSpec((None, tk, Hp), lambda l, i, k: (l, k, 0))
        bgb_spec = pl.BlockSpec((None, 3, Hp), lambda l, i, k: (l, 0, 0),
                                pipeline_mode=pl.Buffered(1))

        kernel = functools.partial(
            _per_level_kernel, apply_gelu=apply_gelu, eps=eps, valid_h=H,
            n_k=n_k, mxu_dtype=mxu_dtype)

        out = pl.pallas_call(
            kernel,
            out_shape=jax.ShapeDtypeStruct((L, M_pad, Hp), out_dtype),
            grid_spec=pltpu.PrefetchScalarGridSpec(
                num_scalar_prefetch=0,
                grid=(L, n_tiles, n_k),
                in_specs=[x_spec, w_spec, bgb_spec],
                out_specs=pl.BlockSpec((None, tm, Hp), lambda l, i, k: (l, i, 0)),
                scratch_shapes=[pltpu.VMEM((tm, Hp), jnp.float32)]),
            compiler_params=pltpu.CompilerParams(
                dimension_semantics=("parallel", "parallel", "arbitrary"),
                vmem_limit_bytes=_VMEM_BUDGET_BYTES),
        )(x_flat, w, bgb)

    out = out[:, :M, :H]
    return out.reshape((L,) + tuple(lead_shape) + (H,))


def init_wscma_params(key, in_dim, hidden_dim, num_feature_levels,
                      dtype=jnp.float32):
    """Deterministic synthetic parameters mirroring WSCMA.__init__ shapes.

    Weights are stored as [in_features, out_features] (transposed relative to
    torch's nn.Linear.weight) so the kernel does x @ W + b.
    """
    params = []
    for lvl in range(num_feature_levels):
        k = jax.random.fold_in(key, lvl)
        k_otk_w, k_otk_b, k_proj_w, k_proj_b = jax.random.split(k, 4)
        otk_w = (jax.random.normal(k_otk_w, (in_dim, hidden_dim), dtype)
                 * (1.0 / jnp.sqrt(in_dim)))
        otk_b = jax.random.normal(k_otk_b, (hidden_dim,), dtype) * 0.02
        proj_w = (jax.random.normal(k_proj_w, (hidden_dim, hidden_dim), dtype)
                  * (1.0 / jnp.sqrt(hidden_dim)))
        proj_b = jax.random.normal(k_proj_b, (hidden_dim,), dtype) * 0.02
        params.append(dict(
            otk_w=otk_w, otk_b=otk_b,
            proj_w=proj_w, proj_b=proj_b,
            img_ln_g=jnp.ones((hidden_dim,), dtype),
            img_ln_b=jnp.zeros((hidden_dim,), dtype),
            txt_ln_g=jnp.ones((hidden_dim,), dtype),
            txt_ln_b=jnp.zeros((hidden_dim,), dtype),
        ))
    return params


def wscma_forward(params, img_srcs, txt_src, mask):
    """Pallas-backed WSCMA.forward. `mask` is unused (as in the reference)."""
    del mask
    L = len(params)

    proj_w = jnp.stack([p["proj_w"] for p in params])    # [L, Hd, Hd]
    proj_b = jnp.stack([p["proj_b"] for p in params])    # [L, Hd]
    img_g = jnp.stack([p["img_ln_g"] for p in params])
    img_be = jnp.stack([p["img_ln_b"] for p in params])
    otk_w = jnp.stack([p["otk_w"] for p in params])      # [L, K, Hd]
    otk_b = jnp.stack([p["otk_b"] for p in params])
    txt_g = jnp.stack([p["txt_ln_g"] for p in params])
    txt_be = jnp.stack([p["txt_ln_b"] for p in params])

    # txt path: shared txt_src is loaded from HBM once per row tile (not L times);
    # the level loop runs inside the kernel against the resident weight stack.
    txt_out = fused_linear_layernorm_levels(
        txt_src, otk_w, otk_b, txt_g, txt_be,
        apply_gelu=True, per_level_x=False)
    txt_feas = [txt_out[l] for l in range(L)]

    # img path: one input per level. Fuse levels into one call when shapes
    # match; otherwise fall back to per-level calls (each still fully fused).
    if len({tuple(s.shape) for s in img_srcs}) == 1:
        img_stack = jnp.stack(img_srcs)                  # [L, B, N_img, Hd]
        img_out = fused_linear_layernorm_levels(
            img_stack, proj_w, proj_b, img_g, img_be,
            apply_gelu=False, per_level_x=True)
        img_feas = [img_out[l] for l in range(L)]
    else:
        img_feas = []
        for l, img_src in enumerate(img_srcs):
            out_l = fused_linear_layernorm_levels(
                img_src[None], proj_w[l:l + 1], proj_b[l:l + 1],
                img_g[l:l + 1], img_be[l:l + 1],
                apply_gelu=False, per_level_x=True)
            img_feas.append(out_l[0])

    return img_feas, txt_feas


def _reference_linear_ln(x, w, b, g, beta, apply_gelu, eps=1e-5):
    y = jnp.dot(x, w) + b
    if apply_gelu:
        y = 0.5 * y * (1.0 + jax.lax.erf(y * 0.7071067811865476))
    mean = jnp.mean(y, axis=-1, keepdims=True)
    var = jnp.mean((y - mean) ** 2, axis=-1, keepdims=True)
    return (y - mean) / jnp.sqrt(var + eps) * g + beta


if __name__ == "__main__":
    key = jax.random.PRNGKey(0)

    # Small shapes consistent with the module's forward:
    #   img_srcs: list (per level) of [B, N_img, hidden_dim]
    #   txt_src:  [B, N_txt, in_dim]
    B = 2
    in_dim = 64
    hidden_dim = 32
    num_feature_levels = 2
    n_img = 16
    n_txt = 8

    k_img, k_txt, k_par = jax.random.split(key, 3)
    img_srcs = [
        jax.random.normal(jax.random.fold_in(k_img, lvl),
                          (B, n_img, hidden_dim), jnp.float32)
        for lvl in range(num_feature_levels)
    ]
    txt_src = jax.random.normal(k_txt, (B, n_txt, in_dim), jnp.float32)
    mask = jnp.ones((B, n_txt), dtype=jnp.bool_)  # unused, signature parity

    params = init_wscma_params(k_par, in_dim, hidden_dim, num_feature_levels)

    img_feas, txt_feas = wscma_forward(params, img_srcs, txt_src, mask)
    jax.block_until_ready((img_feas, txt_feas))

    # Sanity-check against a pure-JAX reference of the same math.
    for lvl, p in enumerate(params):
        ref_img = _reference_linear_ln(
            img_srcs[lvl], p["proj_w"], p["proj_b"],
            p["img_ln_g"], p["img_ln_b"], apply_gelu=False)
        ref_txt = _reference_linear_ln(
            txt_src, p["otk_w"], p["otk_b"],
            p["txt_ln_g"], p["txt_ln_b"], apply_gelu=True)
        assert img_feas[lvl].shape == ref_img.shape
        assert txt_feas[lvl].shape == ref_txt.shape
        assert jnp.allclose(img_feas[lvl], ref_img, atol=1e-4, rtol=1e-4)
        assert jnp.allclose(txt_feas[lvl], ref_txt, atol=1e-4, rtol=1e-4)

    print("KERNEL_OK")
</pallas_src>

<mosaic_0001>
module attributes {stable_mosaic.version = 11 : i64} {
  func.func @_shared_x_kernel(%arg0: i32, %arg1: memref<8x64xf32, #tpu.memory_space<vmem>>, %arg2: memref<2x64x32xf32, #tpu.memory_space<vmem>>, %arg3: memref<2x3x32xf32, #tpu.memory_space<vmem>>, %arg4: memref<2x8x32xf32, #tpu.memory_space<vmem>>) attributes {dimension_semantics = [#tpu.dimension_semantics<parallel>], iteration_bounds = array<i64: 2>, scalar_prefetch = 0 : i64, scratch_operands = 0 : i64, tpu.core_type = #tpu.core_type<tc>, window_params = [{transform_indices = @transform_0, window_bounds = array<i64: 8, 64>}, {pipeline_mode = #tpu.pipeline_mode<synchronous>, transform_indices = @transform_1, window_bounds = array<i64: 2, 64, 32>}, {pipeline_mode = #tpu.pipeline_mode<synchronous>, transform_indices = @transform_2, window_bounds = array<i64: 2, 3, 32>}, {transform_indices = @transform_3, window_bounds = array<i64: 2, 8, 32>}]} {
    %c0 = arith.constant 0 : index
    %c0_0 = arith.constant 0 : index
    %0 = vector.load %arg1[%c0, %c0_0] : memref<8x64xf32, #tpu.memory_space<vmem>>, vector<8x64xf32>
    %c0_1 = arith.constant 0 : index
    %c0_2 = arith.constant 0 : index
    %c0_3 = arith.constant 0 : index
    %1 = vector.load %arg2[%c0_1, %c0_2, %c0_3] : memref<2x64x32xf32, #tpu.memory_space<vmem>>, vector<1x64x32xf32>
    %2 = vector.shape_cast %1 : vector<1x64x32xf32> to vector<64x32xf32>
    %cst = arith.constant dense<0.000000e+00> : vector<8x32xf32>
    %3 = tpu.matmul %0, %2, %cst {dimension_numbers = #tpu.dot_dimension_numbers<[1], [0], [0], [1], [0, 0, 1, 1], [], []>} : vector<8x64xf32>, vector<64x32xf32>, vector<8x32xf32> -> vector<8x32xf32>
    %c0_4 = arith.constant 0 : index
    %c0_5 = arith.constant 0 : index
    %c0_6 = arith.constant 0 : index
    %4 = vector.load %arg3[%c0_4, %c0_5, %c0_6] : memref<2x3x32xf32, #tpu.memory_space<vmem>>, vector<1x3x32xf32>
    %5 = vector.shape_cast %4 : vector<1x3x32xf32> to vector<3x32xf32>
    %6 = vector.extract_strided_slice %5 {offsets = [0, 0], sizes = [1, 32], strides = [1, 1]} : vector<3x32xf32> to vector<1x32xf32>
    %7 = vector.extract_strided_slice %5 {offsets = [1, 0], sizes = [1, 32], strides = [1, 1]} : vector<3x32xf32> to vector<1x32xf32>
    %8 = vector.extract_strided_slice %5 {offsets = [2, 0], sizes = [1, 32], strides = [1, 1]} : vector<3x32xf32> to vector<1x32xf32>
    %9 = vector.broadcast %6 : vector<1x32xf32> to vector<8x32xf32>
    %10 = arith.addf %3, %9 : vector<8x32xf32>
    %cst_7 = arith.constant 5.000000e-01 : f32
    %11 = vector.broadcast %cst_7 : f32 to vector<8x32xf32>
    %12 = arith.mulf %11, %10 : vector<8x32xf32>
    %cst_8 = arith.constant 0.707106769 : f32
    %13 = vector.broadcast %cst_8 : f32 to vector<8x32xf32>
    %14 = arith.mulf %10, %13 : vector<8x32xf32>
    %15 = math.erf %14 : vector<8x32xf32>
    %cst_9 = arith.constant 1.000000e+00 : f32
    %16 = vector.broadcast %cst_9 : f32 to vector<8x32xf32>
    %17 = arith.addf %16, %15 : vector<8x32xf32>
    %18 = arith.mulf %12, %17 : vector<8x32xf32>
    %cst_10 = arith.constant dense<0.000000e+00> : vector<8xf32>
    %19 = vector.multi_reduction <add>, %18, %cst_10 [1] : vector<8x32xf32> to vector<8xf32>
    %20 = vector.shape_cast %19 : vector<8xf32> to vector<8x1xf32>
    %cst_11 = arith.constant 3.125000e-02 : f32
    %21 = vector.broadcast %cst_11 : f32 to vector<8x1xf32>
    %22 = arith.mulf %20, %21 : vector<8x1xf32>
    %23 = vector.broadcast %22 : vector<8x1xf32> to vector<8x32xf32>
    %24 = arith.subf %18, %23 : vector<8x32xf32>
    %25 = arith.mulf %24, %24 : vector<8x32xf32>
    %cst_12 = arith.constant dense<0.000000e+00> : vector<8xf32>
    %26 = vector.multi_reduction <add>, %25, %cst_12 [1] : vector<8x32xf32> to vector<8xf32>
    %27 = vector.shape_cast %26 : vector<8xf32> to vector<8x1xf32>
    %cst_13 = arith.constant 3.125000e-02 : f32
    %28 = vector.broadcast %cst_13 : f32 to vector<8x1xf32>
    %29 = arith.mulf %27, %28 : vector<8x1xf32>
    %cst_14 = arith.constant 9.99999974E-6 : f32
    %30 = vector.broadcast %cst_14 : f32 to vector<8x1xf32>
    %31 = arith.addf %29, %30 : vector<8x1xf32>
    %32 = math.rsqrt %31 : vector<8x1xf32>
    %33 = vector.broadcast %32 : vector<8x1xf32> to vector<8x32xf32>
    %34 = arith.mulf %24, %33 : vector<8x32xf32>
    %35 = vector.broadcast %7 : vector<1x32xf32> to vector<8x32xf32>
    %36 = arith.mulf %34, %35 : vector<8x32xf32>
    %37 = vector.broadcast %8 : vector<1x32xf32> to vector<8x32xf32>
    %38 = arith.addf %36, %37 : vector<8x32xf32>
    %c0_15 = arith.constant 0 : index
    %c0_16 = arith.constant 0 : index
    %c0_17 = arith.constant 0 : index
    %39 = vector.load %arg4[%c0_15, %c0_16, %c0_17] : memref<2x8x32xf32, #tpu.memory_space<vmem>>, vector<1x8x32xf32>
    %40 = vector.shape_cast %39 : vector<1x8x32xf32> to vector<8x32xf32>
    %41 = vector.shape_cast %38 : vector<8x32xf32> to vector<1x8x32xf32>
    tpu.vector_store %arg4[%c0_15, %c0_16, %c0_17], %41 {strides = array<i32>} : memref<2x8x32xf32, #tpu.memory_space<vmem>>, vector<1x8x32xf32>,
    %c1 = arith.constant 1 : index
    %c0_18 = arith.constant 0 : index
    %c0_19 = arith.constant 0 : index
    %42 = vector.load %arg2[%c1, %c0_18, %c0_19] : memref<2x64x32xf32, #tpu.memory_space<vmem>>, vector<1x64x32xf32>
    %43 = vector.shape_cast %42 : vector<1x64x32xf32> to vector<64x32xf32>
    %cst_20 = arith.constant dense<0.000000e+00> : vector<8x32xf32>
    %44 = tpu.matmul %0, %43, %cst_20 {dimension_numbers = #tpu.dot_dimension_numbers<[1], [0], [0], [1], [0, 0, 1, 1], [], []>} : vector<8x64xf32>, vector<64x32xf32>, vector<8x32xf32> -> vector<8x32xf32>
    %c1_21 = arith.constant 1 : index
    %c0_22 = arith.constant 0 : index
    %c0_23 = arith.constant 0 : index
    %45 = vector.load %arg3[%c1_21, %c0_22, %c0_23] : memref<2x3x32xf32, #tpu.memory_space<vmem>>, vector<1x3x32xf32>
    %46 = vector.shape_cast %45 : vector<1x3x32xf32> to vector<3x32xf32>
    %47 = vector.extract_strided_slice %46 {offsets = [0, 0], sizes = [1, 32], strides = [1, 1]} : vector<3x32xf32> to vector<1x32xf32>
    %48 = vector.extract_strided_slice %46 {offsets = [1, 0], sizes = [1, 32], strides = [1, 1]} : vector<3x32xf32> to vector<1x32xf32>
    %49 = vector.extract_strided_slice %46 {offsets = [2, 0], sizes = [1, 32], strides = [1, 1]} : vector<3x32xf32> to vector<1x32xf32>
    %50 = vector.broadcast %47 : vector<1x32xf32> to vector<8x32xf32>
    %51 = arith.addf %44, %50 : vector<8x32xf32>
    %cst_24 = arith.constant 5.000000e-01 : f32
    %52 = vector.broadcast %cst_24 : f32 to vector<8x32xf32>
    %53 = arith.mulf %52, %51 : vector<8x32xf32>
    %cst_25 = arith.constant 0.707106769 : f32
    %54 = vector.broadcast %cst_25 : f32 to vector<8x32xf32>
    %55 = arith.mulf %51, %54 : vector<8x32xf32>
    %56 = math.erf %55 : vector<8x32xf32>
    %cst_26 = arith.constant 1.000000e+00 : f32
    %57 = vector.broadcast %cst_26 : f32 to vector<8x32xf32>
    %58 = arith.addf %57, %56 : vector<8x32xf32>
    %59 = arith.mulf %53, %58 : vector<8x32xf32>
    %cst_27 = arith.constant dense<0.000000e+00> : vector<8xf32>
    %60 = vector.multi_reduction <add>, %59, %cst_27 [1] : vector<8x32xf32> to vector<8xf32>
    %61 = vector.shape_cast %60 : vector<8xf32> to vector<8x1xf32>
    %cst_28 = arith.constant 3.125000e-02 : f32
    %62 = vector.broadcast %cst_28 : f32 to vector<8x1xf32>
    %63 = arith.mulf %61, %62 : vector<8x1xf32>
    %64 = vector.broadcast %63 : vector<8x1xf32> to vector<8x32xf32>
    %65 = arith.subf %59, %64 : vector<8x32xf32>
    %66 = arith.mulf %65, %65 : vector<8x32xf32>
    %cst_29 = arith.constant dense<0.000000e+00> : vector<8xf32>
    %67 = vector.multi_reduction <add>, %66, %cst_29 [1] : vector<8x32xf32> to vector<8xf32>
    %68 = vector.shape_cast %67 : vector<8xf32> to vector<8x1xf32>
    %cst_30 = arith.constant 3.125000e-02 : f32
    %69 = vector.broadcast %cst_30 : f32 to vector<8x1xf32>
    %70 = arith.mulf %68, %69 : vector<8x1xf32>
    %cst_31 = arith.constant 9.99999974E-6 : f32
    %71 = vector.broadcast %cst_31 : f32 to vector<8x1xf32>
    %72 = arith.addf %70, %71 : vector<8x1xf32>
    %73 = math.rsqrt %72 : vector<8x1xf32>
    %74 = vector.broadcast %73 : vector<8x1xf32> to vector<8x32xf32>
    %75 = arith.mulf %65, %74 : vector<8x32xf32>
    %76 = vector.broadcast %48 : vector<1x32xf32> to vector<8x32xf32>
    %77 = arith.mulf %75, %76 : vector<8x32xf32>
    %78 = vector.broadcast %49 : vector<1x32xf32> to vector<8x32xf32>
    %79 = arith.addf %77, %78 : vector<8x32xf32>
    %c1_32 = arith.constant 1 : index
    %c0_33 = arith.constant 0 : index
    %c0_34 = arith.constant 0 : index
    %80 = vector.load %arg4[%c1_32, %c0_33, %c0_34] : memref<2x8x32xf32, #tpu.memory_space<vmem>>, vector<1x8x32xf32>
    %81 = vector.shape_cast %80 : vector<1x8x32xf32> to vector<8x32xf32>
    %82 = vector.shape_cast %79 : vector<8x32xf32> to vector<1x8x32xf32>
    tpu.vector_store %arg4[%c1_32, %c0_33, %c0_34], %82 {strides = array<i32>} : memref<2x8x32xf32, #tpu.memory_space<vmem>>, vector<1x8x32xf32>,
    return
  }
  func.func @transform_0(%arg0: i32) -> (i32, i32) {
    %c0_i32 = arith.constant 0 : i32
    %c0_i32_0 = arith.constant 0 : i32
    return %arg0, %c0_i32 : i32, i32
  }
  func.func @transform_1(%arg0: i32) -> (i32, i32, i32) {
    %c0_i32 = arith.constant 0 : i32
    %c0_i32_0 = arith.constant 0 : i32
    %c0_i32_1 = arith.constant 0 : i32
    %c0_i32_2 = arith.constant 0 : i32
    return %c0_i32, %c0_i32_0, %c0_i32_1 : i32, i32, i32
  }
  func.func @transform_2(%arg0: i32) -> (i32, i32, i32) {
    %c0_i32 = arith.constant 0 : i32
    %c0_i32_0 = arith.constant 0 : i32
    %c0_i32_1 = arith.constant 0 : i32
    %c0_i32_2 = arith.constant 0 : i32
    return %c0_i32, %c0_i32_0, %c0_i32_1 : i32, i32, i32
  }
  func.func @transform_3(%arg0: i32) -> (i32, i32, i32) {
    %c0_i32 = arith.constant 0 : i32
    %c0_i32_0 = arith.constant 0 : i32
    %c0_i32_1 = arith.constant 0 : i32
    return %c0_i32, %arg0, %c0_i32_0 : i32, i32, i32
  }
}

</mosaic_0001>

<bundles_post_ra>
// kernel: tpu_custom_call.1
= control target key start
LH: loop header
LB: loop body
LE: loop exit
PB: predicated region body
PF: predicated region fallthrough
CT: control target
= control target key end

     0   :  { %8 = vsyncpa [#allocation3], 0  ;;  %s854_s0 = inlined_call_operand.vmem [shape: f32[16,64], index: 0, kind: input, shape index: {}]   ;;  %s855_s1 = inlined_call_operand.vmem [shape: f32[2,64,32], index: 1, kind: input, shape index: {}]   ;;  %s856_s2 = inlined_call_operand.vmem [shape: f32[2,3,32], index: 2, kind: input, shape index: {}]   ;;  %s857_s3 = inlined_call_operand.hbm [shape: f32[2,16,32], index: 3, kind: output, shape index: {}]  }
   0x1   :  { %10 = vsyncpa [#allocation3 + $0x1], 0  ;;  %s692_s12 = smov 0   ;;  %s694_s13 = smov 0  }
   0x2   :  { %s696_s14 = smov 0   ;;  %s698_s15 = smov 0  }
   0x3 LB: > { %s713_s16 = sadd.s32 4294967295, %s664_s15   ;;  %s474_s17 = sadd.s32 4294967294, %s664_s15   ;;  %s664_s15 = sphi %s698_s15, %s863_s15   ;;  %s660_s14 = sphi %s696_s14, %s862_s14   ;;  %s656_s13 = sphi %s694_s13, %s861_s13   ;;  %s652_s12 = sphi %s692_s12, %s860_s12  }
   0x4   : > { %s717_s18 = sadd.s32 1, %s664_s15   ;;  %s91_s19 = sadd.s32 1, %s660_s14 }
   0x5   : > { %s88_s20 = ssub.s32 %s664_s15, %s717_s18  ;;  %p101_p0 = scmp.ne.s32.totalorder %s660_s14, %s656_s13 }
   0x6   : > { %p89_p1 = scmp.eq.s32.totalorder %s88_s20, 0  ;;  %p102_p2 = scmp.eq.s32.totalorder %s713_s16, 1 }
   0x7   : > { %p107_p3 = scmp.ne.s32.totalorder %s656_s13, %s652_s12  ;;  %p108_p4 = scmp.eq.s32.totalorder %s474_s17, 1 }
   0x8   : > { %s728_s21 = scalar_select %p89_p1, %s660_s14, %s91_s19  }
   0x9   : > { %p730_p5 = por %p102_p2, %p101_p0  ;;  %p734_p6 = por %p108_p4, %p107_p3 }
   0xa   : > { %p477_p7 = scmp.ge.s32.totalorder %s664_s15, 1  ;;  %p139_p8 = scmp.lt.s32.totalorder %s664_s15, 3 }
   0xc   : > { %p140_p9 = pnand %p477_p7, %p139_p8 }
   0xd   : > { %p162_p10 = scmp.lt.s32.totalorder (!%p140_p9), %s713_s16, 1  ;;  %s159_s29 = sand.u32 (!%p140_p9), 1, %s656_s13  }
   0xe   : > { %143 = sbr.rel (%p140_p9) target bundleno = 579 (0x243), region = 32  ;;  %s478_s30 = sshll.u32 (!%p140_p9), %s159_s29, 4 }
   0xf   : > { %s161_s5 = scalar_lea.vmem (!%p140_p9), [#allocation2], %s478_s30 }
  0x10   : > { %s412_s6 = sshll.u32 (!%p140_p9), %s161_s5, 4  ;;  %s811_s6 = int_to_ptr.vmem [resolvable:$true] %s412_s6 }
  0x11   : > { %s604_s10 = scalar_lea.vmem (!%p140_p9), %s811_s6, 256 }
  0x12   : > { %p605_p11 = scmp.ne.s32.totalorder (!%p140_p9), %s811_s6, %s604_s10 }
  0x13   : > { %v174_v0 = vld [vmem:[%s855_s1 + $0x38] sm:$0xff]  ;;  %v666_v2 = vmov 0.0   ;;  %v173_v3 = vld [vmem:[%s855_s1 + $0x30] sm:$0xff]  ;;  %v172_v5 = vld [vmem:[%s855_s1 + $0x28] sm:$0xff]  ;;  %s163_s19 = scalar_select %p162_p10, %s713_s16, 1  ;;  %vm180_vm0 = vcmask 523264   ;;  %v176_v18 = vlaneseq }
  0x14   : > { %v488_v1 = vld [vmem:[%s855_s1 + $0x78] sm:$0xff]  ;;  %514 = vmatprep.subr.mxu0 %v666_v2  ;;  %533 = vmatprep.subr.mxu1 %v666_v2  ;;  %v487_v4 = vld [vmem:[%s855_s1 + $0x70] sm:$0xff]  ;;  %v486_v6 = vld [vmem:[%s855_s1 + $0x68] sm:$0xff]  ;;  %vm667_vm1 = vmmov 0   ;;  %vm259_vm2 = vcmask 261120   ;;  %p606_p12 = pnand %p605_p11, %p730_p5 }
  0x15   : > { %515 = vmatpush3.msra.mxu0 %v174_v0  ;;  %534 = vmatpush3.msra.mxu1 %v488_v1  ;;  %v171_v7 = vld [vmem:[%s855_s1 + $0x20] sm:$0xff]  ;;  %v170_v9 = vld [vmem:[%s855_s1 + $0x18] sm:$0xff]  ;;  %v169_v11 = vld [vmem:[%s855_s1 + $0x10] sm:$0xff]  ;;  %s479_s4 = sshll.u32 %s163_s19, 3  ;;  %v177_v19 = vshrl.u32 %v176_v18, 7 }
  0x16   : > { %516 = vmatprep.subr.mxu0 %v666_v2  ;;  %535 = vmatprep.subr.mxu1 %v666_v2  ;;  %v485_v8 = vld [vmem:[%s855_s1 + $0x60] sm:$0xff]  ;;  %v484_v10 = vld [vmem:[%s855_s1 + $0x58] sm:$0xff]  ;;  %v483_v12 = vld [vmem:[%s855_s1 + $0x50] sm:$0xff]  ;;  %s165_s11 = scalar_lea.vmem %s854_s0, %s479_s4  ;;  %s493_s4 = sshll.u32 %s713_s16, 7 }
  0x17   : > { %517 = vmatpush3.msra.mxu0 %v173_v3  ;;  %536 = vmatpush3.msra.mxu1 %v487_v4  ;;  %v168_v13 = vld [vmem:[%s855_s1 + $0x8] sm:$0xff]  ;;  %v167_v15 = vld [vmem:[%s855_s1] sm:$0xff]  ;;  %v178_v20 = vsub.s32 0, %v177_v19  ;;  %v275_v59 = vsub.s32 1, %v177_v19  ;;  %v280_v60 = vsub.s32 2, %v177_v19  ;;  %s809_s9 = scalar_lea.hbm %s857_s3, %s493_s4  ;;  %s814_s16 = scalar_lea.sflag [#allocation3], %s159_s29 }
  0x18   : > { %518 = vmatprep.subr.mxu0 %v666_v2  ;;  %537 = vmatprep.subr.mxu1 %v666_v2  ;;  %v482_v14 = vld [vmem:[%s855_s1 + $0x48] sm:$0xff]  ;;  %v481_v16 = vld [vmem:[%s855_s1 + $0x40] sm:$0xff]  ;;  %p607_p13 = pneg %p606_p12 }
  0x19   : > { %519 = vmatpush3.msra.mxu0 %v172_v5  ;;  %538 = vmatpush3.msra.mxu1 %v486_v6  ;;  %v166_v17 = vld [vmem:[%s165_s11] sm:$0xff]  ;;  %s668_s11 = smov [#allocation2]  }
  0x1a   : > { %520 = vmatprep.subr.mxu0 %v666_v2  ;;  %539 = vmatprep.subr.mxu1 %v666_v2  ;;  %v175_v21 = vld [vmem:[%s856_s2] sm:$0x7]  ;;  %v489_v22 = vld [vmem:[%s856_s2 + $0x4] sm:$0x7]  ;;  %s608_s17 = sshll.u32 %s668_s11, 4  ;;  %s609_s17 = int_to_ptr.vmem [resolvable:$false] %s608_s17 }
  0x1b   : > { %521 = vmatpush3.msra.mxu0 %v171_v7  ;;  %540 = vmatpush3.msra.mxu1 %v485_v8  ;;  %v179_v23 = vrot.slane %v175_v21, %v178_v20  ;;  %v298_v24 = vrot.slane %v489_v22, %v178_v20  ;;  %v276_v61 = vrot.slane %v175_v21, %v275_v59  ;;  %s610_s19 = scalar_lea.vmem %s609_s17, 512  ;;  %p611_p0 = scmp.lt.s32.totalorder %s811_s6, %s609_s17 }
  0x1c   : > { %522 = vmatprep.subr.mxu0 %v666_v2  ;;  %541 = vmatprep.subr.mxu1 %v666_v2  ;;  %v281_v63 = vrot.slane %v175_v21, %v280_v60  ;;  %v390_v1 = vrot.slane %v489_v22, %v275_v59  ;;  %v395_v4 = vrot.slane %v489_v22, %v280_v60  ;;  %p612_p1 = scmp.lt.s32.totalorder %s610_s19, %s604_s10 }
  0x1d   : > { %523 = vmatpush3.msra.mxu0 %v170_v9  ;;  %542 = vmatpush3.msra.mxu1 %v484_v10 }
  0x1e   : > { %524 = vmatprep.subr.mxu0 %v666_v2  ;;  %543 = vmatprep.subr.mxu1 %v666_v2  ;;  %p613_p2 = por %p612_p1, %p611_p0 }
  0x1f   : > { %525 = vmatpush3.msra.mxu0 %v169_v11  ;;  %544 = vmatpush3.msra.mxu1 %v483_v12 }
  0x20   : > { %526 = vmatprep.subr.mxu0 %v666_v2  ;;  %545 = vmatprep.subr.mxu1 %v666_v2  ;;  %p614_p3 = pnand %p613_p2, %p607_p13 }
  0x21   : > { %527 = vmatpush3.msra.mxu0 %v168_v13  ;;  %546 = vmatpush3.msra.mxu1 %v482_v14 }
  0x22   : > { %528 = vmatprep.subr.mxu0 %v666_v2  ;;  %547 = vmatprep.subr.mxu1 %v666_v2 }
  0x23   : > { %529 = vmatpush3.msra.mxu0 %v167_v15  ;;  %530 = vmatprep.mubr.msk.f32.mxu0 %vm667_vm1, %v666_v2 }
  0x24   : > { %548 = vmatpush3.msra.mxu1 %v481_v16  ;;  %549 = vmatprep.mubr.msk.f32.mxu1 %vm667_vm1, %v666_v2 }
  0x25   : > { %531 = vmatmul.mubr.msk.f32.vlgmr.msra.gmra.mxu0 %vm180_vm0, %v166_v17  ;;  %550 = vmatmul.mubr.msk.f32.vlgmr.msra.gmra.mxu1 %vm180_vm0, %v166_v17 }
  0xe5   : > { %v250_v25 = vpop.f32.mrf.mxu0  ;;  %v365_v26 = vpop.f32.mrf.mxu1 }
  0xe6   : > { %v251_v27 = vadd.f32 %v250_v25, %v179_v23  ;;  %v366_v28 = vadd.f32 %v365_v26, %v298_v24 }
  0xe7   : > { %v532_v29 = vpop.f32.mrf.mxu0  ;;  %v551_v30 = vpop.f32.mrf.mxu1 }
  0xe8   : > { %v255_v31 = vmul.f32 0.70710677, %v251_v27  ;;  %v370_v32 = vmul.f32 0.70710677, %v366_v28  ;;  %v254_v35 = vmul.f32 0.5, %v251_v27  ;;  %v369_v38 = vmul.f32 0.5, %v366_v28 }
  0xea   : > { %596 = verf.f32 %v255_v31 }
  0xeb   : > { %598 = verf.f32 %v370_v32 }
  0xf7   : > { %v597_v33 = vpop.eup %596 }
  0xf8   : > { %v599_v34 = vpop.eup %598  ;;  %v257_v36 = vadd.f32 1.0, %v597_v33 }
  0xf9   : > { %v372_v37 = vadd.f32 1.0, %v599_v34 }
  0xfa   : > { %v258_v39 = vmul.f32 %v257_v36, %v254_v35 }
  0xfb   : > { %v373_v41 = vmul.f32 %v372_v37, %v369_v38 }
  0xfc   : > { %v260_v40 = vsel %vm259_vm2, %v258_v39, 0.0 }
  0xfd   : > { %261 = vadd.xlane.f32.xlu0 %v260_v40  ;;  %v374_v42 = vsel %vm259_vm2, %v373_v41, 0.0 }
 0x101   : > { %375 = vadd.xlane.f32.xlu0 %v374_v42 }
 0x186   : > { %v262_v43 = vpop.xlane.xlu0 %261 }
 0x187   : > { %v263_v44 = vmul.f32 0.03125, %v262_v43 }
 0x189   : > { %v264_v45 = vsub.f32 %v258_v39, %v263_v44 }
 0x18a   : > { %v376_v46 = vpop.xlane.xlu0 %375 }
 0x18b   : > { %v377_v47 = vmul.f32 0.03125, %v376_v46  ;;  %v265_v48 = vmul.f32 %v264_v45, %v264_v45 }
 0x18d   : > { %v378_v49 = vsub.f32 %v373_v41, %v377_v47  ;;  %v266_v50 = vsel %vm259_vm2, %v265_v48, 0.0 }
 0x18e   : > { %267 = vadd.xlane.f32.xlu1 %v266_v50 }
 0x18f   : > { %v379_v51 = vmul.f32 %v378_v49, %v378_v49 }
 0x191   : > { %v380_v52 = vsel %vm259_vm2, %v379_v51, 0.0 }
 0x192   : > { %381 = vadd.xlane.f32.xlu1 %v380_v52 }
 0x217   : > { %v268_v53 = vpop.xlane.xlu1 %267 }
 0x218   : > { %v269_v54 = vmul.f32 0.03125, %v268_v53 }
 0x21a   : > { %v270_v55 = vadd.f32 1e-05, %v269_v54 }
 0x21b   : > { %v382_v56 = vpop.xlane.xlu1 %381 }
 0x21c   : > { %600 = vrsqrt.f32 %v270_v55  ;;  %v383_v57 = vmul.f32 0.03125, %v382_v56 }
 0x21e   : > { %v384_v58 = vadd.f32 1e-05, %v383_v57 }
 0x220   : > { %602 = vrsqrt.f32 %v384_v58 }
 0x229   : > { %v601_v62 = vpop.eup %600 }
 0x22a   : > { %v272_v0 = vmul.f32 %v601_v62, %v264_v45 }
 0x22c   : > { %v277_v2 = vmul.f32 %v276_v61, %v272_v0 }
 0x22d   : > { %v603_v3 = vpop.eup %602 }
 0x22e   : > { %v282_v5 = vadd.f32 %v281_v63, %v277_v2  ;;  %v386_v6 = vmul.f32 %v603_v3, %v378_v49 }
 0x230   : > { %v391_v7 = vmul.f32 %v390_v1, %v386_v6  ;;  %283 = vst.msk [vmem:[%s161_s5] sm:$0xff] %vm259_vm2, %v282_v5 }
 0x232   : > { %v396_v8 = vadd.f32 %v395_v4, %v391_v7 }
 0x234   : > { %491 = vst.msk [vmem:[%s161_s5 + $0x8] sm:$0xff] %vm259_vm2, %v396_v8 }
 0x235   : > { %617 = shalt.err (!%p614_p3)
}
 0x236   : > { %s618_s20 = scalar_lea.hbm %s809_s9, 256  ;;  %s622_s26 = scalar_lea.hbm %s857_s3, 512 }
 0x237   : > { %p619_p4 = scmp.ne.s32.totalorder %s809_s9, %s618_s20  ;;  %p623_p9 = scmp.lt.s32.totalorder %s809_s9, %s857_s3 }
 0x238   : > { %p624_p10 = scmp.lt.s32.totalorder %s622_s26, %s618_s20 }
 0x239   : > { %p620_p7 = pnand %p619_p4, %p730_p5 }
 0x23a   : > { %p625_p11 = por %p624_p10, %p623_p9 }
 0x23b   : > { %p621_p8 = pneg %p620_p7 }
 0x23d   : > { %p626_p12 = pnand %p625_p11, %p621_p8 }
 0x23f   : > { %629 = shalt.err (!%p626_p12)
}
 0x240   : > { %s669_s29 = smov 128   ;;  %s670_s30 = smov 256  }
 0x241   : > { %s671_s4 = smov 8  }
 0x242   : > { %552 = dma.vmem_to_hbm [thread:$0]  (%p730_p5), %s811_s6, 256, %s809_s9, %s814_s16, %s669_s29, %s670_s30, %s671_s4  }
 0x243 PF: > { %p558_p13 = scmp.ge.s32.totalorder %s664_s15, 2  ;;  %s427_s5 = sand.u32 1, %s652_s12  }
 0x244   : > { %s428_s7 = scalar_lea.sflag [#allocation3], %s427_s5 }
 0x245   : > { %p555_p0 = pnand %p558_p13, %p734_p6 }
 0x247   : > { %p556_p1 = pneg %p555_p0 }
 0x249   : > { %647 = dma.done.wait (%p556_p1), %s428_s7, 256  }
 0x24a   : > { %649 = vsyncadd (%p556_p1), %s428_s7, 4294967040  ;;  %p13_p2 = scmp.ge.s32.totalorder %s717_s18, 4   ;;  %s860_s12 = smov %s656_s13 }
 0x24b   : > { %s861_s13 = smov %s660_s14  ;;  %s862_s14 = smov %s728_s21 }
 0x24c   : > { %s863_s15 = smov %s717_s18  ;;  %15 = sbr.rel (!%p13_p2) target bundleno = 3 (0x3), region = 70 }
 0x251   :  { %433 = vsyncpa [#allocation3], 1 }
 0x252   :  { %435 = vsyncpa [#allocation3 + $0x1], 1 }

</bundles_post_ra>
